<compile_context>
chip_gen: v7x
topology: tpu7x:2x2x1
jax: 0.10.0
libtpu: 0.0.40
codegen_flags: <defaults>
</compile_context>

<pallas_src>
import math

import numpy as np
import jax
import jax.numpy as jnp
from jax.experimental import pallas as pl
from jax.experimental.pallas import tpu as pltpu

_VMEM_LIMIT = 48 * 1024 * 1024   # comfortably inside v5e/v6e (128 MiB) and v7x (64 MiB)


# ----------------------------------------------------------------------------
# helpers
# ----------------------------------------------------------------------------
def _pick_tile(dim, target, align):
    """Largest tile <= target that divides dim and is a multiple of align.

    Falls back to the full dim (always a legal block size).
    # TODO(synk): pad ragged sequence lengths instead of falling back to full dim.
    """
    if dim <= target:
        return dim
    t = (target // align) * align
    while t >= align:
        if dim % t == 0:
            return t
        t -= align
    return dim


# ----------------------------------------------------------------------------
# Fused linear kernel:  y = post(pre(x) @ W + b);  optionally y = res + gate*y
#   pre  in {None, 'silu', 'ln_mod'}
#   post in {None, 'gelu_tanh', 'qk_rope_rmsnorm'}
# ----------------------------------------------------------------------------
def make_linear_kernel(*, pre, post, gated, k_steps, tn,
                       head_dim=None, qk_hidden=None, sm_scale=1.0):

    def kernel(*refs):
        it = iter(refs)
        x_ref = next(it)
        w_ref = next(it)
        b_ref = next(it)
        sc_ref = sh_ref = None
        pea_ref = peb_ref = qs_ref = ks_ref = None
        g_ref = r_ref = None
        if pre == "ln_mod":
            sc_ref = next(it)
            sh_ref = next(it)
        if post == "qk_rope_rmsnorm":
            pea_ref = next(it)
            peb_ref = next(it)
            qs_ref = next(it)
            ks_ref = next(it)
        if gated:
            g_ref = next(it)
            r_ref = next(it)
        o_ref = next(it)
        xm_ref = next(it) if pre == "ln_mod" else None
        acc_ref = next(it) if (pre is None and k_steps > 1) else None

        # Grid indices are read ONLY at the top level of the kernel (never
        # inside pl.when bodies) so interpret mode / Mosaic both handle them.
        nn = pl.program_id(2)
        kk = pl.program_id(3)

        def epilogue(y):
            y = y + b_ref[0, 0].astype(jnp.float32)
            if post == "gelu_tanh":
                c = jnp.float32(math.sqrt(2.0 / math.pi))
                y = 0.5 * y * (1.0 + jnp.tanh(c * (y + 0.044715 * y * y * y)))
            if gated:
                y = r_ref[0].astype(jnp.float32) + g_ref[0].astype(jnp.float32) * y
            if post == "qk_rope_rmsnorm":
                D = head_dim
                dh2 = D // 2
                sec = (nn * tn) // qk_hidden      # 0 = q, 1 = k, 2 = v  (top-level value)
                is_v = sec == 2
                is_q = sec == 0

                @pl.when(is_v)
                def _store_v():                   # V tiles: bias only, no norm/rope work
                    o_ref[0] = y.astype(o_ref.dtype)

                @pl.when(jnp.logical_not(is_v))
                def _store_qk():
                    # per-head RMSNorm (softmax scale folded into the q scale),
                    # then RoPE on the permuted even|odd-contiguous layout:
                    #   out[:dh2]  = p00*even + p01*odd
                    #   out[dh2:]  = p10*even + p11*odd
                    scale = jnp.where(
                        is_q,
                        qs_ref[0, 0].astype(jnp.float32) * jnp.float32(sm_scale),
                        ks_ref[0, 0].astype(jnp.float32))
                    pa = pea_ref[0].astype(jnp.float32)        # (TL, D)
                    pb = peb_ref[0].astype(jnp.float32)
                    a1, a2 = pa[:, :dh2], pa[:, dh2:]
                    b1, b2 = pb[:, :dh2], pb[:, dh2:]
                    parts = []
                    for j in range(tn // D):                   # static, small
                        yj = y[:, j * D:(j + 1) * D]
                        ms = jnp.mean(yj * yj, axis=-1, keepdims=True)
                        yn = yj * jax.lax.rsqrt(ms + 1e-6) * scale
                        h1, h2 = yn[:, :dh2], yn[:, dh2:]
                        parts.append(a1 * h1 + b1 * h2)
                        parts.append(a2 * h2 + b2 * h1)
                    o_ref[0] = jnp.concatenate(parts, axis=-1).astype(o_ref.dtype)
            else:
                o_ref[0] = y.astype(o_ref.dtype)

        if pre == "ln_mod":
            # K is not tiled (k_steps == 1).  Compute LayerNorm + modulate once
            # per (b, row-tile) and cache it; reused for every N tile (the N
            # grid axis is marked "arbitrary" so ordering is guaranteed).
            @pl.when(nn == 0)
            def _cache():
                xf = x_ref[0].astype(jnp.float32)
                mu = jnp.mean(xf, axis=-1, keepdims=True)
                xc = xf - mu
                var = jnp.mean(xc * xc, axis=-1, keepdims=True)
                xn = xc * jax.lax.rsqrt(var + 1e-6)
                xm = ((1.0 + sc_ref[0].astype(jnp.float32)) * xn
                      + sh_ref[0].astype(jnp.float32))
                xm_ref[...] = xm.astype(xm_ref.dtype)

            y = jnp.dot(xm_ref[...], w_ref[...], preferred_element_type=jnp.float32)
            epilogue(y)

        elif pre == "silu":
            xf = x_ref[0].astype(jnp.float32)
            xs = (xf * (1.0 / (1.0 + jnp.exp(-xf)))).astype(x_ref.dtype)
            y = jnp.dot(xs, w_ref[...], preferred_element_type=jnp.float32)
            epilogue(y)

        else:
            if k_steps == 1:
                y = jnp.dot(x_ref[0], w_ref[...], preferred_element_type=jnp.float32)
                epilogue(y)
            else:
                @pl.when(kk == 0)
                def _init():
                    acc_ref[...] = jnp.zeros_like(acc_ref)

                acc_ref[...] += jnp.dot(x_ref[0], w_ref[...],
                                        preferred_element_type=jnp.float32)

                @pl.when(kk == k_steps - 1)
                def _fin():
                    epilogue(acc_ref[...])

    return kernel


def pallas_linear(x, w, b, *, pre=None, post=None,
                  mod_scale=None, mod_shift=None,
                  pe_a=None, pe_b=None, q_scale=None, k_scale=None,
                  qk_hidden=None, head_dim=None, sm_scale=1.0,
                  gate=None, residual=None,
                  tl_target=256, tn_target=512, tk_target=2048):
    """x: (B, L, K), w: (K, N), b: (N,).

    mod_scale/mod_shift: (B, 1, K) for the fused LayerNorm+modulate pre-op.
    pe_a/pe_b: (B, L, head_dim) RoPE tables (permuted layout), q_scale/k_scale:
    (head_dim,) for the fused QK RMSNorm+RoPE epilogue.
    gate: (B, 1, N), residual: (B, L, N) for the fused residual+gate epilogue."""
    B, L, K = x.shape
    N = w.shape[1]
    gated = gate is not None

    TL = _pick_tile(L, tl_target, 8)
    # LayerNorm needs the full row; the modulation row is tiny -> no K tiling.
    TK = K if pre in ("ln_mod", "silu") else _pick_tile(K, tk_target, 128)
    if post == "qk_rope_rmsnorm":
        # N tiles must stay inside a q/k/v section and contain whole heads.
        TN = _pick_tile(qk_hidden, tn_target, head_dim)
        assert qk_hidden % TN == 0 and TN % head_dim == 0
    else:
        TN = _pick_tile(N, tn_target, 128)
    assert L % TL == 0 and N % TN == 0 and K % TK == 0
    k_steps = K // TK
    grid = (B, L // TL, N // TN, k_steps)

    in_specs = [
        pl.BlockSpec((1, TL, TK), lambda bb, ll, nn, kk: (bb, ll, kk)),
        pl.BlockSpec((TK, TN), lambda bb, ll, nn, kk: (kk, nn)),
        pl.BlockSpec((1, 1, TN), lambda bb, ll, nn, kk: (0, 0, nn)),
    ]
    args = [x, w, b.reshape(1, 1, N)]
    if pre == "ln_mod":
        mspec = pl.BlockSpec((1, 1, K), lambda bb, ll, nn, kk: (bb, 0, 0))
        in_specs += [mspec, mspec]
        args += [mod_scale, mod_shift]
    if post == "qk_rope_rmsnorm":
        pspec = pl.BlockSpec((1, TL, head_dim), lambda bb, ll, nn, kk: (bb, ll, 0))
        sspec = pl.BlockSpec((1, 1, head_dim), lambda bb, ll, nn, kk: (0, 0, 0))
        in_specs += [pspec, pspec, sspec, sspec]
        args += [pe_a, pe_b,
                 q_scale.reshape(1, 1, head_dim), k_scale.reshape(1, 1, head_dim)]
    if gated:
        in_specs += [pl.BlockSpec((1, 1, TN), lambda bb, ll, nn, kk: (bb, 0, nn)),
                     pl.BlockSpec((1, TL, TN), lambda bb, ll, nn, kk: (bb, ll, nn))]
        args += [gate, residual]

    scratch_shapes = []
    if pre == "ln_mod":
        scratch_shapes.append(pltpu.VMEM((TL, K), x.dtype))      # cached LN+modulate
    if pre is None and k_steps > 1:
        scratch_shapes.append(pltpu.VMEM((TL, TN), jnp.float32))  # K accumulator

    # The N axis must run sequentially when the LN cache is reused across N tiles.
    nn_sem = "arbitrary" if pre == "ln_mod" else "parallel"
    kernel = make_linear_kernel(pre=pre, post=post, gated=gated, k_steps=k_steps,
                                tn=TN, head_dim=head_dim, qk_hidden=qk_hidden,
                                sm_scale=sm_scale)

    return pl.pallas_call(
        kernel,
        out_shape=jax.ShapeDtypeStruct((B, L, N), x.dtype),
        grid=grid,
        in_specs=in_specs,
        out_specs=pl.BlockSpec((1, TL, TN), lambda bb, ll, nn, kk: (bb, ll, nn)),
        scratch_shapes=scratch_shapes,
        compiler_params=pltpu.CompilerParams(
            dimension_semantics=("parallel", "parallel", nn_sem, "arbitrary"),
            vmem_limit_bytes=_VMEM_LIMIT),
    )(*args)


# ----------------------------------------------------------------------------
# Flash attention (q is pre-rotated + pre-scaled, k pre-rotated in the QKV epilogue)
# ----------------------------------------------------------------------------
def make_attn_kernel(kv_steps, heads_per_blk, head_dim):
    D = head_dim

    def kernel(q_ref, k_ref, v_ref, o_ref, m_sc, l_sc, acc_sc):
        ki = pl.program_id(3)

        @pl.when(ki == 0)
        def _init():
            m_sc[...] = jnp.full(m_sc.shape, -jnp.inf, dtype=m_sc.dtype)
            l_sc[...] = jnp.zeros(l_sc.shape, dtype=l_sc.dtype)
            acc_sc[...] = jnp.zeros(acc_sc.shape, dtype=acc_sc.dtype)

        for h in range(heads_per_blk):
            q = q_ref[0, :, h * D:(h + 1) * D]            # (TQ, D)  input dtype
            k = k_ref[0, :, h * D:(h + 1) * D]            # (TKV, D)
            v = v_ref[0, :, h * D:(h + 1) * D]            # (TKV, D)
            s = jax.lax.dot_general(q, k, (((1,), (1,)), ((), ())),
                                    preferred_element_type=jnp.float32)  # (TQ, TKV)
            m_prev = m_sc[h]
            m_new = jnp.maximum(m_prev, jnp.max(s, axis=-1, keepdims=True))
            alpha = jnp.exp(m_prev - m_new)
            p = jnp.exp(s - m_new)
            l_sc[h] = alpha * l_sc[h] + jnp.sum(p, axis=-1, keepdims=True)
            acc_sc[h] = alpha * acc_sc[h] + jnp.dot(
                p.astype(v_ref.dtype), v, preferred_element_type=jnp.float32)
            m_sc[h] = m_new

        @pl.when(ki == kv_steps - 1)
        def _fin():
            parts = [acc_sc[h] / l_sc[h] for h in range(heads_per_blk)]
            o_ref[0] = jnp.concatenate(parts, axis=-1).astype(o_ref.dtype)

    return kernel


def pallas_attention(qkv, *, num_heads, head_dim,
                     tq_target=512, tkv_target=1024):
    """qkv: (B, L, 3H) laid out (q|k|v) x heads x head_dim; q already carries the
    1/sqrt(D) softmax scale and q/k already carry RoPE.  Returns (B, L, H)."""
    B, L, threeH = qkv.shape
    Hn, D = num_heads, head_dim
    H = Hn * D
    assert threeH == 3 * H
    hpb = 2 if Hn % 2 == 0 else 1       # heads per block (contiguous 2*D DMA windows)
    nhb = Hn // hpb
    TQ = _pick_tile(L, tq_target, 8)
    TKV = _pick_tile(L, tkv_target, 8)
    assert L % TQ == 0 and L % TKV == 0
    kv_steps = L // TKV
    grid = (B, nhb, L // TQ, kv_steps)

    q_spec = pl.BlockSpec((1, TQ, hpb * D), lambda b, hp, qi, ki: (b, qi, hp))
    k_spec = pl.BlockSpec((1, TKV, hpb * D), lambda b, hp, qi, ki: (b, ki, nhb + hp))
    v_spec = pl.BlockSpec((1, TKV, hpb * D), lambda b, hp, qi, ki: (b, ki, 2 * nhb + hp))
    o_spec = pl.BlockSpec((1, TQ, hpb * D), lambda b, hp, qi, ki: (b, qi, hp))

    return pl.pallas_call(
        make_attn_kernel(kv_steps, hpb, D),
        out_shape=jax.ShapeDtypeStruct((B, L, H), qkv.dtype),
        grid=grid,
        in_specs=[q_spec, k_spec, v_spec],
        out_specs=o_spec,
        scratch_shapes=[pltpu.VMEM((hpb, TQ, 1), jnp.float32),   # running max
                        pltpu.VMEM((hpb, TQ, 1), jnp.float32),   # running denom
                        pltpu.VMEM((hpb, TQ, D), jnp.float32)],  # running acc
        compiler_params=pltpu.CompilerParams(
            dimension_semantics=("parallel", "parallel", "parallel", "arbitrary"),
            vmem_limit_bytes=_VMEM_LIMIT),
    )(qkv, qkv, qkv)


# ----------------------------------------------------------------------------
# Offline weight-layout preparation (zero runtime cost in a real deployment)
# ----------------------------------------------------------------------------
def prepare_params(p, hidden_size, num_heads, head_dim):
    """Permute Q/K columns of the qkv projections (and the RMSNorm scales) so the
    RoPE even components occupy the first head_dim/2 columns of each head, and
    fuse the two Modulation linears into one (H, 12H) matmul."""
    H, Hn, D = hidden_size, num_heads, head_dim
    perm_head = np.concatenate([np.arange(0, D, 2), np.arange(1, D, 2)])
    cols = np.arange(3 * H)
    for sec in range(2):                 # q and k sections only; v untouched
        for h in range(Hn):
            base = sec * H + h * D
            cols[base:base + D] = base + perm_head
    out = dict(p)
    for s in ("img", "txt"):
        out[f"{s}_qkv_w_p"] = p[f"{s}_qkv_w"][:, cols]
        out[f"{s}_qkv_b_p"] = p[f"{s}_qkv_b"][cols]
        out[f"{s}_qn_p"] = p[f"{s}_qn"][perm_head]
        out[f"{s}_kn_p"] = p[f"{s}_kn"][perm_head]
    out["mod_w_cat"] = jnp.concatenate([p["img_mod_w"], p["txt_mod_w"]], axis=1)
    out["mod_b_cat"] = jnp.concatenate([p["img_mod_b"], p["txt_mod_b"]], axis=0)
    return out


# ----------------------------------------------------------------------------
# DoubleStreamBlock forward (Pallas)
# ----------------------------------------------------------------------------
def double_stream_block(p, img, txt, vec, pe, num_heads):
    B, Li, H = img.shape
    Lt = txt.shape[1]
    Hn = num_heads
    D = H // Hn
    sm_scale = 1.0 / math.sqrt(D)

    # Both Modulation linears in one fused matmul: lin(silu(vec)) -> 12 x (B,1,H)
    vec3 = vec[:, None, :]
    mods = pallas_linear(vec3, p["mod_w_cat"], p["mod_b_cat"], pre="silu")
    (i_sh1, i_sc1, i_g1, i_sh2, i_sc2, i_g2,
     t_sh1, t_sc1, t_g1, t_sh2, t_sc2, t_g2) = jnp.split(mods, 12, axis=-1)

    # RoPE coefficient tables for the permuted (even|odd contiguous halves) layout.
    p00 = pe[:, 0, :, :, 0, 0]
    p01 = pe[:, 0, :, :, 0, 1]
    p10 = pe[:, 0, :, :, 1, 0]
    p11 = pe[:, 0, :, :, 1, 1]
    pe_a = jnp.concatenate([p00, p11], axis=-1).astype(jnp.float32)   # (B, L, D)
    pe_b = jnp.concatenate([p01, p10], axis=-1).astype(jnp.float32)
    pe_a_txt, pe_a_img = pe_a[:, :Lt], pe_a[:, Lt:]
    pe_b_txt, pe_b_img = pe_b[:, :Lt], pe_b[:, Lt:]

    # Fused LN+modulate -> QKV matmul -> per-head QK RMSNorm + RoPE (+ q * 1/sqrt(D)).
    img_qkv = pallas_linear(img, p["img_qkv_w_p"], p["img_qkv_b_p"],
                            pre="ln_mod", mod_scale=i_sc1, mod_shift=i_sh1,
                            post="qk_rope_rmsnorm",
                            pe_a=pe_a_img, pe_b=pe_b_img,
                            q_scale=p["img_qn_p"], k_scale=p["img_kn_p"],
                            qk_hidden=H, head_dim=D, sm_scale=sm_scale)
    txt_qkv = pallas_linear(txt, p["txt_qkv_w_p"], p["txt_qkv_b_p"],
                            pre="ln_mod", mod_scale=t_sc1, mod_shift=t_sh1,
                            post="qk_rope_rmsnorm",
                            pe_a=pe_a_txt, pe_b=pe_b_txt,
                            q_scale=p["txt_qn_p"], k_scale=p["txt_kn_p"],
                            qk_hidden=H, head_dim=D, sm_scale=sm_scale)
    # TODO(synk): write both streams straight into one (B,L,3H) buffer
    # (input_output_aliases + ll offset) to remove this single HBM concat.
    qkv = jnp.concatenate([txt_qkv, img_qkv], axis=1)          # (B, L, 3H)

    attn = pallas_attention(qkv, num_heads=Hn, head_dim=D)     # (B, L, H)
    # TODO(synk): give the proj linears an ll-offset index_map instead of slicing.
    txt_attn, img_attn = attn[:, :Lt], attn[:, Lt:]

    def post_stream(x, a, g1, sc2, sh2, g2, proj_w, proj_b, w1, b1, w2, b2):
        # x1 = x + gate1 * proj(attn)
        x1 = pallas_linear(a, proj_w, proj_b, gate=g1, residual=x)
        # out = x1 + gate2 * mlp2(gelu(mlp1((1+scale2)*LN(x1)+shift2)))
        h = pallas_linear(x1, w1, b1, pre="ln_mod", mod_scale=sc2, mod_shift=sh2,
                          post="gelu_tanh")
        return pallas_linear(h, w2, b2, gate=g2, residual=x1)

    img_out = post_stream(img, img_attn, i_g1, i_sc2, i_sh2, i_g2,
                          p["img_proj_w"], p["img_proj_b"],
                          p["img_mlp_w1"], p["img_mlp_b1"],
                          p["img_mlp_w2"], p["img_mlp_b2"])
    txt_out = post_stream(txt, txt_attn, t_g1, t_sc2, t_sh2, t_g2,
                          p["txt_proj_w"], p["txt_proj_b"],
                          p["txt_mlp_w1"], p["txt_mlp_b1"],
                          p["txt_mlp_w2"], p["txt_mlp_b2"])
    return img_out, txt_out


# ----------------------------------------------------------------------------
# Pure-JAX reference (mirrors the PyTorch forward) for correctness checking
# ----------------------------------------------------------------------------
def reference_forward(p, img, txt, vec, pe, num_heads):
    hp = jax.lax.Precision.HIGHEST
    H = img.shape[-1]
    D = H // num_heads
    B, Li, _ = img.shape
    Lt = txt.shape[1]
    L = Lt + Li

    lin = lambda x, w, b: jnp.dot(x, w, precision=hp) + b
    silu = lambda x: x * jax.nn.sigmoid(x)
    gelu = lambda x: 0.5 * x * (1.0 + jnp.tanh(
        jnp.sqrt(2.0 / jnp.pi) * (x + 0.044715 * x ** 3)))

    def layernorm(x):
        mu = x.mean(-1, keepdims=True)
        var = ((x - mu) ** 2).mean(-1, keepdims=True)
        return (x - mu) * jax.lax.rsqrt(var + 1e-6)

    def rmsnorm(x, s):
        return x * jax.lax.rsqrt(jnp.mean(x * x, -1, keepdims=True) + 1e-6) * s

    def modulation(w, b):
        out = lin(silu(vec), w, b)[:, None, :]
        return jnp.split(out, 6, axis=-1)

    i_sh1, i_sc1, i_g1, i_sh2, i_sc2, i_g2 = modulation(p["img_mod_w"], p["img_mod_b"])
    t_sh1, t_sc1, t_g1, t_sh2, t_sc2, t_g2 = modulation(p["txt_mod_w"], p["txt_mod_b"])

    def qkv_heads(xm, w, b):
        qkv = lin(xm, w, b).reshape(B, -1, 3, num_heads, D).transpose(2, 0, 3, 1, 4)
        return qkv[0], qkv[1], qkv[2]

    img_m = (1 + i_sc1) * layernorm(img) + i_sh1
    iq, ik, iv = qkv_heads(img_m, p["img_qkv_w"], p["img_qkv_b"])
    iq, ik = rmsnorm(iq, p["img_qn"]), rmsnorm(ik, p["img_kn"])

    txt_m = (1 + t_sc1) * layernorm(txt) + t_sh1
    tq, tk, tv = qkv_heads(txt_m, p["txt_qkv_w"], p["txt_qkv_b"])
    tq, tk = rmsnorm(tq, p["txt_qn"]), rmsnorm(tk, p["txt_kn"])

    q = jnp.concatenate([tq, iq], axis=2)
    k = jnp.concatenate([tk, ik], axis=2)
    v = jnp.concatenate([tv, iv], axis=2)

    def apply_rope(x):
        xs = x.reshape(*x.shape[:-1], -1, 1, 2)
        out = pe[..., 0] * xs[..., 0] + pe[..., 1] * xs[..., 1]
        return out.reshape(*x.shape)

    qr, kr = apply_rope(q), apply_rope(k)
    scores = jnp.einsum("bhqd,bhkd->bhqk", qr, kr, precision=hp) / math.sqrt(D)
    probs = jax.nn.softmax(scores, axis=-1)
    attn = jnp.einsum("bhqk,bhkd->bhqd", probs, v, precision=hp)
    attn = attn.transpose(0, 2, 1, 3).reshape(B, L, H)
    t_attn, i_attn = attn[:, :Lt], attn[:, Lt:]

    img1 = img + i_g1 * lin(i_attn, p["img_proj_w"], p["img_proj_b"])
    img_out = img1 + i_g2 * lin(
        gelu(lin((1 + i_sc2) * layernorm(img1) + i_sh2,
                 p["img_mlp_w1"], p["img_mlp_b1"])),
        p["img_mlp_w2"], p["img_mlp_b2"])

    txt1 = txt + t_g1 * lin(t_attn, p["txt_proj_w"], p["txt_proj_b"])
    txt_out = txt1 + t_g2 * lin(
        gelu(lin((1 + t_sc2) * layernorm(txt1) + t_sh2,
                 p["txt_mlp_w1"], p["txt_mlp_b1"])),
        p["txt_mlp_w2"], p["txt_mlp_b2"])
    return img_out, txt_out


# ----------------------------------------------------------------------------
# Standalone self-tests for paths not exercised at the small main shapes
# ----------------------------------------------------------------------------
def _selftest_linear_acc(key):
    """Exercise the streamed-K accumulator path (k_steps > 1) + gated epilogue."""
    kx, kw, kb, kg, kr = jax.random.split(key, 5)
    x = jax.random.normal(kx, (2, 16, 512), jnp.float32)
    w = jax.random.normal(kw, (512, 256), jnp.float32) * 0.05
    b = jax.random.normal(kb, (256,), jnp.float32)
    g = jax.random.normal(kg, (2, 1, 256), jnp.float32)
    r = jax.random.normal(kr, (2, 16, 256), jnp.float32)
    out = pallas_linear(x, w, b, gate=g, residual=r, tk_target=128)
    ref = r + g * (jnp.dot(x, w, precision=jax.lax.Precision.HIGHEST) + b)
    np.testing.assert_allclose(np.asarray(out), np.asarray(ref), rtol=2e-2, atol=2e-3)


def _selftest_attention(key):
    """Exercise multi-kv-step online softmax and the 2-heads-per-block layout."""
    Hn, D = 2, 128
    H = Hn * D
    B, L = 2, 32
    qkv = jax.random.normal(key, (B, L, 3 * H), jnp.float32) * 0.5
    out = pallas_attention(qkv, num_heads=Hn, head_dim=D, tq_target=16, tkv_target=8)
    hpc = jax.lax.Precision.HIGHEST
    q = qkv[..., :H].reshape(B, L, Hn, D).transpose(0, 2, 1, 3)
    k = qkv[..., H:2 * H].reshape(B, L, Hn, D).transpose(0, 2, 1, 3)
    v = qkv[..., 2 * H:].reshape(B, L, Hn, D).transpose(0, 2, 1, 3)
    s = jnp.einsum("bhqd,bhkd->bhqk", q, k, precision=hpc)
    p_ = jax.nn.softmax(s, axis=-1)
    ref = jnp.einsum("bhqk,bhkd->bhqd", p_, v, precision=hpc)
    ref = ref.transpose(0, 2, 1, 3).reshape(B, L, H)
    np.testing.assert_allclose(np.asarray(out), np.asarray(ref), rtol=2e-2, atol=2e-3)


# ----------------------------------------------------------------------------
# Main
# ----------------------------------------------------------------------------
if __name__ == "__main__":
    # Small, module-consistent shapes (head_dim kept at 128 for lane-dense tiles).
    B = 2
    num_heads = 2
    head_dim = 128
    hidden_size = num_heads * head_dim          # 256
    mlp_ratio = 4.0
    mlp_hidden = int(hidden_size * mlp_ratio)   # 1024
    L_txt, L_img = 8, 16
    L = L_txt + L_img

    key = jax.random.PRNGKey(0)
    kiter = iter(jax.random.split(key, 64))

    def W(shape, scale=0.05):
        return jax.random.normal(next(kiter), shape, jnp.float32) * scale

    H, M = hidden_size, mlp_hidden
    params = {}
    for s in ("img", "txt"):
        params[f"{s}_mod_w"] = W((H, 6 * H)); params[f"{s}_mod_b"] = W((6 * H,))
        params[f"{s}_qkv_w"] = W((H, 3 * H)); params[f"{s}_qkv_b"] = W((3 * H,))
        params[f"{s}_qn"] = 1.0 + W((head_dim,), 0.1)
        params[f"{s}_kn"] = 1.0 + W((head_dim,), 0.1)
        params[f"{s}_proj_w"] = W((H, H)); params[f"{s}_proj_b"] = W((H,))
        params[f"{s}_mlp_w1"] = W((H, M)); params[f"{s}_mlp_b1"] = W((M,))
        params[f"{s}_mlp_w2"] = W((M, H)); params[f"{s}_mlp_b2"] = W((H,))

    img = jax.random.normal(next(kiter), (B, L_img, H), jnp.float32)
    txt = jax.random.normal(next(kiter), (B, L_txt, H), jnp.float32)
    vec = jax.random.normal(next(kiter), (B, H), jnp.float32)

    # pe built with the flux rope() convention: (B, 1, L, head_dim//2, 2, 2)
    pos = jnp.arange(L, dtype=jnp.float32)
    scale_r = jnp.arange(0, head_dim, 2, dtype=jnp.float32) / head_dim
    omega = 1.0 / (10000.0 ** scale_r)
    ang = jnp.einsum("n,d->nd", pos, omega)
    pe_flat = jnp.stack([jnp.cos(ang), -jnp.sin(ang), jnp.sin(ang), jnp.cos(ang)], axis=-1)
    pe = jnp.broadcast_to(
        pe_flat.reshape(1, 1, L, head_dim // 2, 2, 2), (B, 1, L, head_dim // 2, 2, 2)
    ).astype(jnp.float32)

    # self-tests for the K-streamed accumulator and flash-attention paths
    _selftest_linear_acc(next(kiter))
    _selftest_attention(next(kiter))

    prepared = prepare_params(params, hidden_size, num_heads, head_dim)

    img_out, txt_out = double_stream_block(prepared, img, txt, vec, pe, num_heads)
    img_out = jax.block_until_ready(img_out)
    txt_out = jax.block_until_ready(txt_out)

    img_ref, txt_ref = reference_forward(params, img, txt, vec, pe, num_heads)
    np.testing.assert_allclose(np.asarray(img_out), np.asarray(img_ref), rtol=2e-2, atol=2e-3)
    np.testing.assert_allclose(np.asarray(txt_out), np.asarray(txt_ref), rtol=2e-2, atol=2e-3)

    print("KERNEL_OK")
</pallas_src>

<mosaic_0001>
module attributes {stable_mosaic.version = 11 : i64} {
  func.func @kernel(%arg0: i32, %arg1: i32, %arg2: i32, %arg3: i32, %arg4: memref<1x16x128xf32, #tpu.memory_space<vmem>>, %arg5: memref<128x256xf32, #tpu.memory_space<vmem>>, %arg6: memref<1x1x256xf32, #tpu.memory_space<vmem>>, %arg7: memref<1x1x256xf32, #tpu.memory_space<vmem>>, %arg8: memref<1x16x256xf32, #tpu.memory_space<vmem>>, %arg9: memref<1x16x256xf32, #tpu.memory_space<vmem>>, %arg10: memref<16x256xf32, #tpu.memory_space<vmem>>) attributes {dimension_semantics = [#tpu.dimension_semantics<parallel>, #tpu.dimension_semantics<parallel>, #tpu.dimension_semantics<parallel>, #tpu.dimension_semantics<arbitrary>], iteration_bounds = array<i64: 2, 1, 1, 4>, scalar_prefetch = 0 : i64, scratch_operands = 1 : i64, tpu.core_type = #tpu.core_type<tc>, window_params = [{transform_indices = @transform_0, window_bounds = array<i64: 1, 16, 128>}, {transform_indices = @transform_1, window_bounds = array<i64: 128, 256>}, {transform_indices = @transform_2, window_bounds = array<i64: 1, 1, 256>}, {transform_indices = @transform_3, window_bounds = array<i64: 1, 1, 256>}, {transform_indices = @transform_4, window_bounds = array<i64: 1, 16, 256>}, {transform_indices = @transform_5, window_bounds = array<i64: 1, 16, 256>}]} {
    %c0_i32 = arith.constant 0 : i32
    %0 = arith.cmpi eq, %arg3, %c0_i32 : i32
    %1 = arith.extui %0 : i1 to i32
    %c0_i32_0 = arith.constant 0 : i32
    %2 = arith.cmpi ne, %1, %c0_i32_0 : i32
    scf.if %2 {
      %cst_10 = arith.constant 0.000000e+00 : f32
      %13 = vector.broadcast %cst_10 : f32 to vector<16x256xf32>
      %c0_11 = arith.constant 0 : index
      %c0_12 = arith.constant 0 : index
      %14 = vector.load %arg10[%c0_11, %c0_12] : memref<16x256xf32, #tpu.memory_space<vmem>>, vector<16x256xf32>
      tpu.vector_store %arg10[%c0_11, %c0_12], %13 {strides = array<i32>} : memref<16x256xf32, #tpu.memory_space<vmem>>, vector<16x256xf32>,
    } else {
    }
    %c0 = arith.constant 0 : index
    %c0_1 = arith.constant 0 : index
    %3 = vector.load %arg10[%c0, %c0_1] : memref<16x256xf32, #tpu.memory_space<vmem>>, vector<16x256xf32>
    %c0_2 = arith.constant 0 : index
    %c0_3 = arith.constant 0 : index
    %c0_4 = arith.constant 0 : index
    %4 = vector.load %arg4[%c0_2, %c0_3, %c0_4] : memref<1x16x128xf32, #tpu.memory_space<vmem>>, vector<1x16x128xf32>
    %5 = vector.shape_cast %4 : vector<1x16x128xf32> to vector<16x128xf32>
    %c0_5 = arith.constant 0 : index
    %c0_6 = arith.constant 0 : index
    %6 = vector.load %arg5[%c0_5, %c0_6] : memref<128x256xf32, #tpu.memory_space<vmem>>, vector<128x256xf32>
    %cst = arith.constant dense<0.000000e+00> : vector<16x256xf32>
    %7 = tpu.matmul %5, %6, %cst {dimension_numbers = #tpu.dot_dimension_numbers<[1], [0], [0], [1], [0, 0, 1, 1], [], []>} : vector<16x128xf32>, vector<128x256xf32>, vector<16x256xf32> -> vector<16x256xf32>
    %8 = arith.addf %3, %7 : vector<16x256xf32>
    %c0_7 = arith.constant 0 : index
    %c0_8 = arith.constant 0 : index
    %9 = vector.load %arg10[%c0_7, %c0_8] : memref<16x256xf32, #tpu.memory_space<vmem>>, vector<16x256xf32>
    tpu.vector_store %arg10[%c0_7, %c0_8], %8 {strides = array<i32>} : memref<16x256xf32, #tpu.memory_space<vmem>>, vector<16x256xf32>,
    %c3_i32 = arith.constant 3 : i32
    %10 = arith.cmpi eq, %arg3, %c3_i32 : i32
    %11 = arith.extui %10 : i1 to i32
    %c0_i32_9 = arith.constant 0 : i32
    %12 = arith.cmpi ne, %11, %c0_i32_9 : i32
    scf.if %12 {
      %c0_10 = arith.constant 0 : index
      %c0_11 = arith.constant 0 : index
      %13 = vector.load %arg10[%c0_10, %c0_11] : memref<16x256xf32, #tpu.memory_space<vmem>>, vector<16x256xf32>
      %c0_12 = arith.constant 0 : index
      %c0_13 = arith.constant 0 : index
      %c0_14 = arith.constant 0 : index
      %14 = vector.load %arg6[%c0_12, %c0_13, %c0_14] : memref<1x1x256xf32, #tpu.memory_space<vmem>>, vector<1x1x256xf32>
      %15 = vector.shape_cast %14 : vector<1x1x256xf32> to vector<256xf32>
      %16 = vector.shape_cast %15 : vector<256xf32> to vector<1x256xf32>
      %17 = vector.broadcast %16 : vector<1x256xf32> to vector<16x256xf32>
      %18 = arith.addf %13, %17 : vector<16x256xf32>
      %c0_15 = arith.constant 0 : index
      %c0_16 = arith.constant 0 : index
      %c0_17 = arith.constant 0 : index
      %19 = vector.load %arg8[%c0_15, %c0_16, %c0_17] : memref<1x16x256xf32, #tpu.memory_space<vmem>>, vector<1x16x256xf32>
      %20 = vector.shape_cast %19 : vector<1x16x256xf32> to vector<16x256xf32>
      %c0_18 = arith.constant 0 : index
      %c0_19 = arith.constant 0 : index
      %c0_20 = arith.constant 0 : index
      %21 = vector.load %arg7[%c0_18, %c0_19, %c0_20] : memref<1x1x256xf32, #tpu.memory_space<vmem>>, vector<1x1x256xf32>
      %22 = vector.shape_cast %21 : vector<1x1x256xf32> to vector<1x256xf32>
      %23 = vector.broadcast %22 : vector<1x256xf32> to vector<16x256xf32>
      %24 = arith.mulf %23, %18 : vector<16x256xf32>
      %25 = arith.addf %20, %24 : vector<16x256xf32>
      %c0_21 = arith.constant 0 : index
      %c0_22 = arith.constant 0 : index
      %c0_23 = arith.constant 0 : index
      %26 = vector.load %arg9[%c0_21, %c0_22, %c0_23] : memref<1x16x256xf32, #tpu.memory_space<vmem>>, vector<1x16x256xf32>
      %27 = vector.shape_cast %26 : vector<1x16x256xf32> to vector<16x256xf32>
      %28 = vector.shape_cast %25 : vector<16x256xf32> to vector<1x16x256xf32>
      tpu.vector_store %arg9[%c0_21, %c0_22, %c0_23], %28 {strides = array<i32>} : memref<1x16x256xf32, #tpu.memory_space<vmem>>, vector<1x16x256xf32>,
    } else {
    }
    return
  }
  func.func @transform_0(%arg0: i32, %arg1: i32, %arg2: i32, %arg3: i32) -> (i32, i32, i32) {
    %c0_i32 = arith.constant 0 : i32
    return %arg0, %arg1, %arg3 : i32, i32, i32
  }
  func.func @transform_1(%arg0: i32, %arg1: i32, %arg2: i32, %arg3: i32) -> (i32, i32) {
    %c0_i32 = arith.constant 0 : i32
    return %arg3, %arg2 : i32, i32
  }
  func.func @transform_2(%arg0: i32, %arg1: i32, %arg2: i32, %arg3: i32) -> (i32, i32, i32) {
    %c0_i32 = arith.constant 0 : i32
    %c0_i32_0 = arith.constant 0 : i32
    %c0_i32_1 = arith.constant 0 : i32
    return %c0_i32, %c0_i32_0, %arg2 : i32, i32, i32
  }
  func.func @transform_3(%arg0: i32, %arg1: i32, %arg2: i32, %arg3: i32) -> (i32, i32, i32) {
    %c0_i32 = arith.constant 0 : i32
    %c0_i32_0 = arith.constant 0 : i32
    return %arg0, %c0_i32, %arg2 : i32, i32, i32
  }
  func.func @transform_4(%arg0: i32, %arg1: i32, %arg2: i32, %arg3: i32) -> (i32, i32, i32) {
    %c0_i32 = arith.constant 0 : i32
    return %arg0, %arg1, %arg2 : i32, i32, i32
  }
  func.func @transform_5(%arg0: i32, %arg1: i32, %arg2: i32, %arg3: i32) -> (i32, i32, i32) {
    %c0_i32 = arith.constant 0 : i32
    return %arg0, %arg1, %arg2 : i32, i32, i32
  }
}

</mosaic_0001>

<bundles_post_ra>
// kernel: tpu_custom_call.1
= control target key start
LH: loop header
LB: loop body
LE: loop exit
PB: predicated region body
PF: predicated region fallthrough
CT: control target
= control target key end

     0   :  { %s1803_s0 = inlined_call_operand.hbm [shape: f32[2,16,512], index: 0, kind: input, shape index: {}]   ;;  %s1804_s1 = inlined_call_operand.hbm [shape: f32[512,256], index: 1, kind: input, shape index: {}]   ;;  %s1805_s2 = inlined_call_operand.vmem [shape: f32[1,1,256], index: 2, kind: input, shape index: {}]   ;;  %s1806_s3 = inlined_call_operand.vmem [shape: f32[2,1,256], index: 3, kind: input, shape index: {}]   ;;  %s1807_s4 = inlined_call_operand.hbm [shape: f32[2,16,256], index: 4, kind: input, shape index: {}]   ;;  %s1808_s5 = inlined_call_operand.hbm [shape: f32[2,16,256], index: 5, kind: output, shape index: {}]  }
   0x1   :  { %1824 = sst [smem:[#allocation21_spill]] %s1803_s0 }
   0x2   :  { %1825 = sst [smem:[#allocation22_spill]] %s1804_s1 }
   0x3   :  { %1826 = sst [smem:[#allocation23_spill]] %s1805_s2 }
   0x4   :  { %1827 = sst [smem:[#allocation24_spill]] %s1808_s5 }
   0x5   :  { %10 = vsyncpa [#allocation4], 0 }
   0x6   :  { %12 = vsyncpa [#allocation4 + $0x1], 0 }
   0x7   :  { %13 = vsyncpa [#allocation7], 0 }
   0x8   :  { %15 = vsyncpa [#allocation7 + $0x1], 0 }
   0x9   :  { %16 = vsyncpa [#allocation5], 0 }
   0xa   :  { %18 = vsyncpa [#allocation5 + $0x1], 0  ;;  %s1324_s18 = smov 0   ;;  %s1326_s19 = smov 0  }
   0xb   :  { %s1328_s20 = smov 0   ;;  %s1330_s21 = smov 0  }
   0xc   :  { %s1332_s22 = smov 0   ;;  %s1334_s23 = smov 0  }
   0xd   :  { %s1336_s24 = smov 0   ;;  %s1338_s25 = smov 0  }
   0xe   :  { %s1340_s26 = smov 0   ;;  %s1342_s27 = smov 0  }
   0xf   :  { %s1344_s28 = smov 0   ;;  %s1346_s29 = smov 0  }
  0x10   :  { %s1348_s30 = smov 0   ;;  %s1350_s6 = smov 0  }
  0x11 LB: > { %1828 = sst [smem:[#allocation14_spill]] %s1247_s23  ;;  %s1395_s7 = sadd.s32 4294967295, %s1279_s6   ;;  %s1279_s6 = sphi %s1350_s6, %s24_s6   ;;  %s1275_s30 = sphi %s1348_s30, %s1873_s30   ;;  %s1271_s29 = sphi %s1346_s29, %s1882_s29   ;;  %s1267_s28 = sphi %s1344_s28, %s1871_s28   ;;  %s1263_s27 = sphi %s1342_s27, %s1870_s27   ;;  %s1259_s26 = sphi %s1340_s26, %s1881_s26   ;;  %s1255_s25 = sphi %s1338_s25, %s1880_s25   ;;  %s1251_s24 = sphi %s1336_s24, %s1879_s24   ;;  %s1247_s23 = sphi %s1334_s23, %s1869_s23   ;;  %s1243_s22 = sphi %s1332_s22, %s1878_s22   ;;  %s1239_s21 = sphi %s1330_s21, %s1877_s21   ;;  %s1235_s20 = sphi %s1328_s20, %s1876_s20   ;;  %s1231_s19 = sphi %s1326_s19, %s1875_s19   ;;  %s1227_s18 = sphi %s1324_s18, %s1874_s18  }
  0x12   : > { %1829 = sst [smem:[#allocation15_spill]] %s1263_s27  ;;  %s39_s8 = sadd.s32 1, %s1271_s29 }
  0x13   : > { %1830 = sst [smem:[#allocation16_spill]] %s1271_s29  ;;  %p40_p0 = scmp.ge.s32.totalorder %s39_s8, 4 }
  0x14   : > { %1831 = sst [smem:[#allocation17_spill]] %s1275_s30  ;;  %s50_s9 = sadd.s32 1, %s1275_s30 }
  0x15   : > { %p1814_p1 = scmp.eq.s32.totalorder %s1279_s6, 0  ;;  %p1813_p2 = scmp.eq.s32.totalorder %s1395_s7, 0 }
  0x16   : > { %s1884_s8 = smov (%p40_p0, %s39_s8), 0  ;;  %s1886_s9 = smov (!%p40_p0, %s50_s9), %s1275_s30 }
  0x17   : > { %1832 = sst [smem:[#allocation18_spill]] %s1884_s8  ;;  %s57_s10 = ssub.s32 %s1271_s29, %s1884_s8 }
  0x18   : > { %s89_s11 = sadd.s32 1, %s1247_s23  ;;  %p52_p3 = scmp.ge.s32.totalorder %s1886_s9, 2 }
  0x19   : > { %p87_p4 = scmp.eq.s32.totalorder %s57_s10, 0  ;;  %p96_p5 = scmp.ne.s32.totalorder %s1247_s23, %s1243_s22 }
  0x1a   : > { %p102_p6 = scmp.ne.s32.totalorder %s1243_s22, %s1239_s21  ;;  %s1888_s9 = smov (%p52_p3, %s1886_s9), 0 }
  0x1b   : > { %1833 = sst [smem:[#allocation19_spill]] %s1888_s9  ;;  %s1418_s13 = ssub.s32 %s1275_s30, %s1888_s9 }
  0x1c   : > { %s1414_s12 = scalar_select %p87_p4, %s1247_s23, %s89_s11  }
  0x1d   : > { %p1422_p7 = por %p96_p5, %p1814_p1  ;;  %s58_s15 = sor.u32 %s57_s10, %s1418_s13 }
  0x1e   : > { %1834 = sst [smem:[#allocation20_spill]] %s1414_s12  ;;  %p1429_p8 = por %p102_p6, %p1813_p2 }
  0x1f   : > { %p1433_p9 = scmp.eq.s32.totalorder %s58_s15, 0  ;;  %p1812_p11 = scmp.lt.s32.totalorder %s1279_s6, 8 }
  0x20   : > { %s1836_s16 = scalar_select %p1429_p8, 1, 0 }
  0x21   : > { %s273_s21 = sand.u32 1, %s1279_s6   ;;  %s275_s11 = sand.u32 1, %s1247_s23  }
  0x22   : > { %s818_s9 = sshll.u32 %s275_s11, 8  ;;  %s839_s8 = sshll.u32 %s1271_s29, 12 }
  0x23   : > { %s1838_s1 = sld [smem:[#allocation22_spill]]  ;;  %s277_s10 = scalar_lea.vmem [#allocation6], %s818_s9 }
  0x24   : > { %s287_s15 = sshll.u32 %s277_s10, 4  ;;  %p1453_p12 = pnand %p1812_p11, %p1422_p7  ;;  %s1447_s15 = int_to_ptr.vmem [resolvable:$true] %s287_s15 }
  0x25   : > { %s1458_s5 = scalar_lea.sflag [#allocation7], %s273_s21 }
  0x26   : > { %p1037_p3 = pneg %p1453_p12 }
  0x29   : > { %s1445_s2 = scalar_lea.hbm %s1838_s1, %s839_s8  ;;  %s1040_s14 = scalar_lea.hbm %s1838_s1, 16384 }
  0x2a   : > { %s1035_s8 = scalar_lea.hbm %s1445_s2, 4096  ;;  %p1041_p6 = scmp.lt.u32.totalorder %s1445_s2, %s1838_s1 }
  0x2b   : > { %p1036_p0 = scmp.ne.s32.totalorder %s1445_s2, %s1035_s8  ;;  %p1042_p7 = scmp.lt.u32.totalorder %s1040_s14, %s1035_s8 }
  0x2c   : > { %p1044_p11 = scmp.lt.u32.totalorder %s1035_s8, %s1445_s2 }
  0x2d   : > { %p1038_p4 = pnand %p1037_p3, %p1036_p0  ;;  %p1043_p10 = por %p1042_p7, %p1041_p6 }
  0x2f   : > { %p1039_p5 = pneg %p1038_p4  ;;  %p1045_p2 = por %p1044_p11, %p1043_p10 }
  0x31   : > { %p1046_p1 = pnand %p1045_p2, %p1039_p5 }
  0x33   : > { %1049 = shalt.err (!%p1046_p1)
}
  0x34   : > { %s1050_s21 = scalar_lea.vmem %s1447_s15, 4096  ;;  %s1281_s9 = smov [#allocation6]  }
  0x35   : > { %p1051_p0 = scmp.ne.s32.totalorder %s1447_s15, %s1050_s21  ;;  %s1055_s12 = sshll.u32 %s1281_s9, 4  ;;  %s1056_s12 = int_to_ptr.vmem [resolvable:$false] %s1055_s12 }
  0x36   : > { %s1057_s11 = scalar_lea.vmem %s1056_s12, 8192  ;;  %p1058_p8 = scmp.lt.s32.totalorder %s1447_s15, %s1056_s12 }
  0x37   : > { %p1053_p4 = pnand %p1051_p0, %p1037_p3  ;;  %p1059_p6 = scmp.lt.s32.totalorder %s1057_s11, %s1050_s21 }
  0x39   : > { %p1054_p13 = pneg %p1053_p4  ;;  %p1060_p7 = por %p1059_p6, %p1058_p8 }
  0x3b   : > { %p1061_p10 = pnand %p1060_p7, %p1054_p13 }
  0x3d   : > { %1064 = shalt.err (!%p1061_p10)
}
  0x3e   : > { %s1816_s8 = smov 256   ;;  %s1817_s14 = smov 16  }
  0x3f   : > { %904 = dma.hbm_to_vmem [thread:$0]  (!%p1453_p12), %s1445_s2, 4096, %s1447_s15, %s1458_s5, %s1816_s8, %s1816_s8, %s1817_s14  }
  0x40   : > { %p333_p1 = scmp.lt.s32.totalorder %s1279_s6, 9  ;;  %p1840_p2 = scmp.ge.s32.totalorder %s1279_s6, 1 }
  0x41   : > { %s61_s21 = sadd.s32 1, %s1259_s26  ;;  %p68_p11 = scmp.ne.s32.totalorder %s1259_s26, %s1255_s25 }
  0x42   : > { %p1492_p8 = pnand %p1840_p2, %p333_p1  ;;  %p1842_p13 = scmp.eq.s32.totalorder %s1279_s6, 0 }
  0x43   : > { %s1502_s9 = scalar_select %p1433_p9, %s1259_s26, %s61_s21  }
  0x44   : > { %p70_p3 = por %p1842_p13, %p68_p11  ;;  %p74_p5 = scmp.ne.s32.totalorder %s1255_s25, %s1251_s24 }
  0x45   : > { %s248_s27 = sand.u32 1, %s1259_s26   ;;  %s816_s12 = sshll.u32 %s1275_s30, 3 }
  0x46   : > { %p1843_p0 = scmp.eq.s32.totalorder %s1395_s7, 0  ;;  %s815_s15 = sshll.u32 %s248_s27, 4 }
  0x47   : > { %s260_s11 = sadd.s32 %s1271_s29, %s816_s12  ;;  %s1845_s0 = sld [smem:[#allocation21_spill]] }
  0x48   : > { %p1512_p4 = por %p1843_p0, %p74_p5  ;;  %s817_s8 = sshll.u32 %s260_s11, 7 }
  0x49   : > { %s252_s24 = scalar_lea.vmem [#allocation3], %s815_s15  ;;  %p1846_p9 = scmp.lt.s32.totalorder %s1279_s6, 8 }
  0x4a   : > { %s1844_s2 = scalar_select %p1512_p4, 1, 0 }
  0x4b   : > { %s263_s17 = sshll.u32 %s252_s24, 4  ;;  %p1526_p12 = pnand %p1846_p9, %p70_p3  ;;  %s1522_s17 = int_to_ptr.vmem [resolvable:$true] %s263_s17 }
  0x4c   : > { %s1530_s12 = scalar_lea.sflag [#allocation4], %s248_s27 }
  0x4d   : > { %s1520_s23 = scalar_lea.hbm %s1845_s0, %s817_s8  ;;  %p1067_p7 = pneg %p1526_p12 }
  0x4e   : > { %s1065_s1 = scalar_lea.hbm %s1520_s23, 256  ;;  %s1070_s15 = scalar_lea.hbm %s1845_s0, 2048 }
  0x4f   : > { %p1066_p6 = scmp.ne.s32.totalorder %s1520_s23, %s1065_s1  ;;  %p1071_p2 = scmp.lt.u32.totalorder %s1520_s23, %s1845_s0 }
  0x50   : > { %p1072_p11 = scmp.lt.u32.totalorder %s1070_s15, %s1065_s1  ;;  %p1074_p3 = scmp.lt.u32.totalorder %s1065_s1, %s1520_s23 }
  0x51   : > { %p1068_p10 = pnand %p1067_p7, %p1066_p6 }
  0x52   : > { %p1073_p13 = por %p1072_p11, %p1071_p2 }
  0x53   : > { %p1069_p1 = pneg %p1068_p10 }
  0x54   : > { %p1075_p5 = por %p1074_p3, %p1073_p13 }
  0x56   : > { %p1076_p0 = pnand %p1075_p5, %p1069_p1 }
  0x58   : > { %1079 = shalt.err (!%p1076_p0)
}
  0x59   : > { %s1080_s27 = scalar_lea.vmem %s1522_s17, 256  ;;  %s1284_s8 = smov [#allocation3]  }
  0x5a   : > { %p1081_p9 = scmp.ne.s32.totalorder %s1522_s17, %s1080_s27  ;;  %s1085_s14 = sshll.u32 %s1284_s8, 4  ;;  %s1086_s14 = int_to_ptr.vmem [resolvable:$false] %s1085_s14 }
  0x5b   : > { %s1087_s11 = scalar_lea.vmem %s1086_s14, 512  ;;  %p1088_p4 = scmp.lt.s32.totalorder %s1522_s17, %s1086_s14 }
  0x5c   : > { %p1083_p6 = pnand %p1081_p9, %p1067_p7  ;;  %p1089_p2 = scmp.lt.s32.totalorder %s1087_s11, %s1080_s27 }
  0x5e   : > { %p1084_p10 = pneg %p1083_p6  ;;  %p1090_p11 = por %p1089_p2, %p1088_p4 }
  0x60   : > { %p1091_p13 = pnand %p1090_p11, %p1084_p10 }
  0x62   : > { %1094 = shalt.err (!%p1091_p13)
}
  0x63   : > { %s1285_s1 = smov 512   ;;  %s1286_s15 = smov 128  }
  0x64   : > { %s1287_s24 = smov 8   ;;  %s811_s27 = sadd.s32 4294967294, %s1279_s6  }
  0x65   : > { %901 = dma.hbm_to_vmem [thread:$0]  (!%p1526_p12), %s1520_s23, 256, %s1522_s17, %s1530_s12, %s1285_s1, %s1286_s15, %s1287_s24  }
  0x66   : > { %s173_s8 = sadd.s32 1, %s1235_s20  ;;  %p1848_p4 = scmp.eq.s32.totalorder %s1418_s13, 0 }
  0x67   : > { %p180_p7 = scmp.ne.s32.totalorder %s1235_s20, %s1231_s19  ;;  %p186_p1 = scmp.ne.s32.totalorder %s1231_s19, %s1227_s18 }
  0x68   : > { %s1563_s14 = scalar_select %p1848_p4, %s1235_s20, %s173_s8  }
  0x69   : > { %p214_p3 = scmp.eq.s32.totalorder %s1395_s7, 7  ;;  %p220_p5 = scmp.eq.s32.totalorder %s811_s27, 7 }
  0x6a   : > { %p1849_p0 = scmp.eq.s32.totalorder %s1279_s6, 0  ;;  %p1850_p6 = scmp.eq.s32.totalorder %s1395_s7, 0 }
  0x6b   : > { %p1578_p2 = por %p214_p3, %p180_p7  ;;  %p1582_p12 = por %p220_p5, %p186_p1 }
  0x6c   : > { %p182_p9 = por %p180_p7, %p1849_p0  ;;  %p1574_p10 = por %p186_p1, %p1850_p6 }
  0x6d   : > { %s1852_s21 = scalar_select %p1578_p2, 1, 0 }
  0x6e   : > { %s1851_s11 = scalar_select %p1574_p10, 1, 0 }
  0x6f   : > { %s1853_s23 = scalar_select %p1582_p12, 1, 0 }
  0x70   : > { %s311_s13 = sand.u32 1, %s1235_s20   ;;  %s840_s17 = sshll.u32 %s1275_s30, 9 }
  0x71   : > { %s822_s12 = sshll.u32 %s311_s13, 5  ;;  %s1591_s24 = scalar_lea.hbm %s1807_s4, %s840_s17 }
  0x72   : > { %p1854_p11 = scmp.lt.s32.totalorder %s1279_s6, 8  ;;  %s313_s8 = scalar_lea.vmem [#allocation8], %s822_s12 }
  0x73   : > { %s325_s0 = sshll.u32 %s313_s8, 4  ;;  %s1095_s13 = scalar_lea.hbm %s1591_s24, 512  ;;  %s1599_s0 = int_to_ptr.vmem [resolvable:$true] %s325_s0 }
  0x74   : > { %p1595_p13 = pnand %p1854_p11, %p182_p9  ;;  %p1096_p4 = scmp.ne.s32.totalorder %s1591_s24, %s1095_s13 }
  0x75   : > { %s1100_s15 = scalar_lea.hbm %s1807_s4, 1024  ;;  %p1101_p5 = scmp.lt.u32.totalorder %s1591_s24, %s1807_s4 }
  0x76   : > { %p1097_p7 = pneg %p1595_p13  ;;  %p1102_p0 = scmp.lt.u32.totalorder %s1100_s15, %s1095_s13 }
  0x77   : > { %p1104_p6 = scmp.lt.u32.totalorder %s1095_s13, %s1591_s24 }
  0x78   : > { %p1098_p1 = pnand %p1097_p7, %p1096_p4  ;;  %p1103_p9 = por %p1102_p0, %p1101_p5 }
  0x7a   : > { %p1099_p3 = pneg %p1098_p1  ;;  %p1105_p11 = por %p1104_p6, %p1103_p9 }
  0x7c   : > { %p1106_p12 = pnand %p1105_p11, %p1099_p3 }
  0x7e   : > { %1109 = shalt.err (!%p1106_p12)
}
  0x7f   : > { %s1110_s12 = scalar_lea.vmem %s1599_s0, 512  ;;  %s1288_s8 = smov [#allocation8]  }
  0x80   : > { %p1111_p4 = scmp.ne.s32.totalorder %s1599_s0, %s1110_s12  ;;  %s1115_s17 = sshll.u32 %s1288_s8, 4  ;;  %s1116_s17 = int_to_ptr.vmem [resolvable:$false] %s1115_s17 }
  0x81   : > { %s1117_s29 = scalar_lea.vmem %s1116_s17, 1024  ;;  %p1118_p10 = scmp.lt.s32.totalorder %s1599_s0, %s1116_s17 }
  0x82   : > { %p1113_p1 = pnand %p1111_p4, %p1097_p7  ;;  %p1119_p5 = scmp.lt.s32.totalorder %s1117_s29, %s1110_s12 }
  0x84   : > { %p1114_p2 = pneg %p1113_p1  ;;  %p1120_p0 = por %p1119_p5, %p1118_p10 }
  0x86   : > { %p1121_p9 = pnand %p1120_p0, %p1114_p2 }
  0x88   : > { %1124 = shalt.err (!%p1121_p9)
}
  0x89   : > { %s1856_s30 = smov 16   ;;  %s1857_s13 = smov 256  }
  0x8a   : > { %907 = dma.hbm_to_vmem [thread:$0]  (!%p1595_p13), %s1591_s24, 512, %s1599_s0, %s1458_s5, %s1857_s13, %s1857_s13, %s1856_s30  }
  0x8b   : > { %337 = sbr.rel (%p1492_p8) target bundleno = 464 (0x1d0), region = 40  ;;  %s339_s1 = sand.u32 (!%p1492_p8), 1, %s1255_s25  }
  0x8c   : > { %s1633_s15 = sshll.u32 (!%p1492_p8), %s339_s1, 4  ;;  %s340_s12 = scalar_lea.sflag (!%p1492_p8), [#allocation4], %s339_s1 }
  0x8d   : > { %s343_s8 = scalar_lea.vmem (!%p1492_p8), [#allocation3], %s1633_s15  ;;  %p1858_p10 = scmp.ne.s32.totalorder (!%p1492_p8), %s1844_s2, 0 }
  0x92   : > { %1210 = dma.done.wait (%p1858_p10), %s340_s12, 256  }
  0x93   : > { %1212 = vsyncadd (%p1858_p10), %s340_s12, 4294967040  ;;  %s348_s0 = sand.u32 1, %s1395_s7   ;;  %s350_s5 = sand.u32 1, %s1243_s22  }
  0x94   : > { %s827_s10 = sshll.u32 %s350_s5, 8  ;;  %s349_s24 = scalar_lea.sflag [#allocation7], %s348_s0 }
  0x95   : > { %s1642_s27 = scalar_lea.vmem [#allocation6], %s827_s10  ;;  %p1859_p8 = scmp.ne.s32.totalorder %s1836_s16, 0 }
  0x97   : > { %1214 = dma.done.wait (%p1859_p8), %s349_s24, 4096  }
  0x98   : > { %1216 = vsyncadd (%p1859_p8), %s349_s24, 4294963200  ;;  %s359_s17 = sand.u32 1, %s1231_s19   ;;  %p1860_p2 = scmp.ne.s32.totalorder %s1851_s11, 0 }
  0x99   : > { %s828_s2 = sshll.u32 %s359_s17, 5 }
  0x9a   : > { %s1651_s29 = scalar_lea.vmem [#allocation8], %s828_s2 }
  0x9b   : > { %1218 = dma.done.wait (%p1860_p2), %s349_s24, 512  }
  0x9c   : > { %1220 = vsyncadd (%p1860_p2), %s349_s24, 4294966784  ;;  %p419_p12 = scmp.lt.s32.totalorder %s1267_s28, 1  ;;  %s1664_s12 = scalar_lea.vmem [#allocation9], %s828_s2 }
  0x9d   : > { %s1861_s0 = sld [smem:[#allocation15_spill]] }
  0x9e   : > { %s420_s7 = scalar_select %p419_p12, %s1267_s28, 1 }
  0xa0   : > { %s830_s30 = sshll.u32 %s420_s7, 1 }
  0xa1   : > { %s1662_s1 = scalar_lea.vmem %s1806_s3, %s830_s30 }
  0xa3   : > { %p831_p13 = scmp.ne.s32.totalorder %s1861_s0, 0 }
  0xa4   : > { %v1289_v0 = vmov (!%p831_p13), 0.0  }
  0xa5   : > { %434 = sbr.rel (%p831_p13) target bundleno = 172 (0xac), region = 56  ;;  %435 = vst [vmem:[#allocation2] sm:$0xff] (!%p831_p13), %v1289_v0  ;;  %436 = vst [vmem:[#allocation2 + $0x8] sm:$0xff] (!%p831_p13), %v1289_v0 }
  0xa6   : > { %437 = vst [vmem:[#allocation2 + $0x10] sm:$0xff] (!%p831_p13), %v1289_v0  ;;  %438 = vst [vmem:[#allocation2 + $0x18] sm:$0xff] (!%p831_p13), %v1289_v0 }
  0xac PF: > { %v446_v1 = vld [vmem:[%s1642_s27 + $0x8] sm:$0xff]  ;;  %v448_v2 = vld [vmem:[%s1642_s27 + $0x18] sm:$0xff]  ;;  %v445_v3 = vld [vmem:[%s1642_s27] sm:$0xff]  ;;  %v1290_v8 = vmov 0.0   ;;  %s1862_s11 = sld [smem:[#allocation15_spill]] }
  0xad   : > { %v842_v4 = vpack.c.bf16 %v448_v2, %v446_v1  ;;  %v447_v5 = vld [vmem:[%s1642_s27 + $0x10] sm:$0xff]  ;;  %v450_v6 = vld [vmem:[%s1642_s27 + $0x28] sm:$0xff]  ;;  %v452_v7 = vld [vmem:[%s1642_s27 + $0x38] sm:$0xff]  ;;  %541 = vmatprep.mubr.f32.mxu0 %v1290_v8  ;;  %547 = vmatprep.mubr.f32.mxu1 %v1290_v8 }
  0xae   : > { %v844_v9 = vpack.c.bf16 %v447_v5, %v445_v3  ;;  %v846_v10 = vpack.c.bf16 %v452_v7, %v450_v6  ;;  %v449_v11 = vld [vmem:[%s1642_s27 + $0x20] sm:$0xff]  ;;  %v451_v12 = vld [vmem:[%s1642_s27 + $0x30] sm:$0xff]  ;;  %v454_v13 = vld [vmem:[%s1642_s27 + $0x48] sm:$0xff] }
  0xaf   : > { %843 = vmatprep.subr.bf16.mxu0 %v842_v4  ;;  %874 = vmatprep.subr.bf16.mxu1 %v842_v4  ;;  %v456_v14 = vld [vmem:[%s1642_s27 + $0x58] sm:$0xff]  ;;  %v848_v15 = vpack.c.bf16 %v451_v12, %v449_v11  ;;  %v453_v17 = vld [vmem:[%s1642_s27 + $0x40] sm:$0xff]  ;;  %v455_v18 = vld [vmem:[%s1642_s27 + $0x50] sm:$0xff] }
  0xb0   : > { %845 = vmatpush1.bf16.msra.mxu0 %v844_v9  ;;  %882 = vmatpush1.bf16.msra.mxu1 %v844_v9  ;;  %v850_v16 = vpack.c.bf16 %v456_v14, %v454_v13  ;;  %v458_v19 = vld [vmem:[%s1642_s27 + $0x68] sm:$0xff]  ;;  %v460_v20 = vld [vmem:[%s1642_s27 + $0x78] sm:$0xff]  ;;  %v852_v21 = vpack.c.bf16 %v455_v18, %v453_v17  ;;  %v457_v23 = vld [vmem:[%s1642_s27 + $0x60] sm:$0xff] }
  0xb1   : > { %847 = vmatprep.subr.bf16.mxu0 %v846_v10  ;;  %875 = vmatprep.subr.bf16.mxu1 %v846_v10  ;;  %v854_v22 = vpack.c.bf16 %v460_v20, %v458_v19  ;;  %v459_v24 = vld [vmem:[%s1642_s27 + $0x70] sm:$0xff]  ;;  %v462_v25 = vld [vmem:[%s1642_s27 + $0x88] sm:$0xff]  ;;  %v464_v26 = vld [vmem:[%s1642_s27 + $0x98] sm:$0xff] }
  0xb2   : > { %v856_v27 = vpack.c.bf16 %v459_v24, %v457_v23  ;;  %v858_v28 = vpack.c.bf16 %v464_v26, %v462_v25  ;;  %v461_v29 = vld [vmem:[%s1642_s27 + $0x80] sm:$0xff]  ;;  %v463_v30 = vld [vmem:[%s1642_s27 + $0x90] sm:$0xff]  ;;  %v466_v31 = vld [vmem:[%s1642_s27 + $0xa8] sm:$0xff]  ;;  %p832_p7 = scmp.ne.s32.totalorder %s1862_s11, 3 }
  0xb3   : > { %v468_v32 = vld [vmem:[%s1642_s27 + $0xb8] sm:$0xff]  ;;  %v860_v33 = vpack.c.bf16 %v463_v30, %v461_v29  ;;  %v465_v35 = vld [vmem:[%s1642_s27 + $0xa0] sm:$0xff]  ;;  %v467_v36 = vld [vmem:[%s1642_s27 + $0xb0] sm:$0xff]  ;;  %v572_v0 = vlaneseq (!%p832_p7)  ;;  %s1863_s5 = sld [smem:[#allocation23_spill]] (!%p832_p7) }
  0xb4   : > { %849 = vmatpush1.bf16.msra.mxu0 %v848_v15  ;;  %883 = vmatpush1.bf16.msra.mxu1 %v848_v15  ;;  %v862_v34 = vpack.c.bf16 %v468_v32, %v466_v31  ;;  %v470_v37 = vld [vmem:[%s1642_s27 + $0xc8] sm:$0xff]  ;;  %v472_v38 = vld [vmem:[%s1642_s27 + $0xd8] sm:$0xff]  ;;  %v864_v39 = vpack.c.bf16 %v467_v36, %v465_v35  ;;  %v469_v41 = vld [vmem:[%s1642_s27 + $0xc0] sm:$0xff] }
  0xb5   : > { %851 = vmatprep.subr.bf16.mxu0 %v850_v16  ;;  %876 = vmatprep.subr.bf16.mxu1 %v850_v16  ;;  %v866_v40 = vpack.c.bf16 %v472_v38, %v470_v37  ;;  %v471_v42 = vld [vmem:[%s1642_s27 + $0xd0] sm:$0xff]  ;;  %v474_v43 = vld [vmem:[%s1642_s27 + $0xe8] sm:$0xff]  ;;  %v476_v44 = vld [vmem:[%s1642_s27 + $0xf8] sm:$0xff]  ;;  %v573_v1 = vshrl.u32 (!%p832_p7), %v572_v0, 7 }
  0xb6   : > { %v868_v45 = vpack.c.bf16 %v471_v42, %v469_v41  ;;  %v870_v46 = vpack.c.bf16 %v476_v44, %v474_v43  ;;  %v473_v47 = vld [vmem:[%s1642_s27 + $0xe0] sm:$0xff]  ;;  %v475_v48 = vld [vmem:[%s1642_s27 + $0xf0] sm:$0xff]  ;;  %v444_v51 = vld [vmem:[%s343_s8 + $0x8] sm:$0xff] }
  0xb7   : > { %v872_v49 = vpack.c.bf16 %v475_v48, %v473_v47  ;;  %v443_v50 = vld [vmem:[%s343_s8] sm:$0xff]  ;;  %v440_v54 = vld [vmem:[#allocation2 + $0x8] sm:$0xff]  ;;  %v442_v55 = vld [vmem:[#allocation2 + $0x18] sm:$0xff]  ;;  %v574_v5 = vsub.s32 (!%p832_p7), 0, %v573_v1  ;;  %v578_v6 = vsub.s32 (!%p832_p7), 1, %v573_v1 }
  0xb8   : > { %853 = vmatpush1.bf16.msra.mxu0 %v852_v21  ;;  %884 = vmatpush1.bf16.msra.mxu1 %v852_v21  ;;  %v439_v52 = vld [vmem:[#allocation2] sm:$0xff]  ;;  %v441_v53 = vld [vmem:[#allocation2 + $0x10] sm:$0xff]  ;;  %v587_v19 = vld [vmem:[%s1651_s29 + $0x8] sm:$0xff] (!%p832_p7) }
  0xb9   : > { %855 = vmatprep.subr.bf16.mxu0 %v854_v22  ;;  %877 = vmatprep.subr.bf16.mxu1 %v854_v22  ;;  %v570_v2 = vld [vmem:[%s1863_s5] sm:$0x3] (!%p832_p7)  ;;  %v588_v20 = vld [vmem:[%s1651_s29 + $0x10] sm:$0xff] (!%p832_p7)  ;;  %v589_v21 = vld [vmem:[%s1651_s29 + $0x18] sm:$0xff] (!%p832_p7) }
  0xba   : > { %v590_v3 = vld [vmem:[%s1662_s1] sm:$0x3] (!%p832_p7)  ;;  %v575_v10 = vrot.slane (!%p832_p7), %v570_v2, %v574_v5  ;;  %v579_v12 = vrot.slane (!%p832_p7), %v570_v2, %v578_v6 }
  0xbb   : > { %v595_v11 = vrot.slane (!%p832_p7), %v590_v3, %v574_v5  ;;  %v599_v13 = vrot.slane (!%p832_p7), %v590_v3, %v578_v6  ;;  %v586_v15 = vld [vmem:[%s1651_s29] sm:$0xff] (!%p832_p7) }
  0xbc   : > { %857 = vmatpush1.bf16.msra.mxu0 %v856_v27  ;;  %885 = vmatpush1.bf16.msra.mxu1 %v856_v27 }
  0xbd   : > { %859 = vmatprep.subr.bf16.mxu0 %v858_v28  ;;  %878 = vmatprep.subr.bf16.mxu1 %v858_v28 }
  0xc0   : > { %861 = vmatpush1.bf16.msra.mxu0 %v860_v33  ;;  %886 = vmatpush1.bf16.msra.mxu1 %v860_v33 }
  0xc1   : > { %863 = vmatprep.subr.bf16.mxu0 %v862_v34  ;;  %879 = vmatprep.subr.bf16.mxu1 %v862_v34 }
  0xc4   : > { %865 = vmatpush1.bf16.msra.mxu0 %v864_v39  ;;  %887 = vmatpush1.bf16.msra.mxu1 %v864_v39 }
  0xc5   : > { %867 = vmatprep.subr.bf16.mxu0 %v866_v40  ;;  %880 = vmatprep.subr.bf16.mxu1 %v866_v40 }
  0xc8   : > { %869 = vmatpush1.bf16.msra.mxu0 %v868_v45  ;;  %888 = vmatpush1.bf16.msra.mxu1 %v868_v45 }
  0xc9   : > { %871 = vmatprep.subr.bf16.mxu0 %v870_v46  ;;  %881 = vmatprep.subr.bf16.mxu1 %v870_v46 }
  0xcc   : > { %873 = vmatpush1.bf16.msra.mxu0 %v872_v49  ;;  %889 = vmatpush1.bf16.msra.mxu1 %v872_v49 }
  0xcf   : > { %542 = vmatmul.mubr.f32.vlgmr.msra.gmra.mrb[0].mxu0 %v443_v50  ;;  %548 = vmatmul.mubr.f32.vlgmr.msra.gmra.mrb[0].mxu1 %v444_v51 }
 0x1a0   : > { %565 = sbr.rel (%p832_p7) target bundleno = 437 (0x1b5), region = 60 }
 0x1a2   : > { %v543_v56 = vpop.f32.mrb[0].mxu0  ;;  %v549_v57 = vpop.f32.mrb[0].mxu1 }
 0x1a3   : > { %v554_v58 = vadd.f32 %v543_v56, %v439_v52  ;;  %v556_v59 = vadd.f32 %v549_v57, %v441_v53  ;;  %v545_v60 = vpop.f32.mrb[1].mxu0  ;;  %v551_v61 = vpop.f32.mrb[1].mxu1 }
 0x1a4   : > { %v555_v62 = vadd.f32 %v545_v60, %v440_v54  ;;  %v557_v63 = vadd.f32 %v551_v61, %v442_v55 }
 0x1a5   : > { %558 = vst [vmem:[#allocation2] sm:$0xff] %v554_v58  ;;  %560 = vst [vmem:[#allocation2 + $0x10] sm:$0xff] %v556_v59 }
 0x1a6   : > { %559 = vst [vmem:[#allocation2 + $0x8] sm:$0xff] %v555_v62  ;;  %561 = vst [vmem:[#allocation2 + $0x18] sm:$0xff] %v557_v63 }
 0x1ac   : > { %v566_v4 = vld [vmem:[#allocation2] sm:$0xff]  ;;  %v568_v8 = vld [vmem:[#allocation2 + $0x10] sm:$0xff] }
 0x1ad   : > { %v567_v7 = vld [vmem:[#allocation2 + $0x8] sm:$0xff]  ;;  %v569_v9 = vld [vmem:[#allocation2 + $0x18] sm:$0xff]  ;;  %v582_v14 = vadd.f32 %v575_v10, %v566_v4  ;;  %v584_v17 = vadd.f32 %v575_v10, %v568_v8 }
 0x1ae   : > { %v583_v16 = vadd.f32 %v579_v12, %v567_v7  ;;  %v585_v18 = vadd.f32 %v579_v12, %v569_v9 }
 0x1af   : > { %v602_v22 = vmul.f32 %v595_v11, %v582_v14  ;;  %v604_v24 = vmul.f32 %v595_v11, %v584_v17 }
 0x1b0   : > { %v603_v23 = vmul.f32 %v599_v13, %v583_v16  ;;  %v605_v25 = vmul.f32 %v599_v13, %v585_v18 }
 0x1b1   : > { %v606_v26 = vadd.f32 %v602_v22, %v586_v15  ;;  %v608_v28 = vadd.f32 %v604_v24, %v588_v20 }
 0x1b2   : > { %v607_v27 = vadd.f32 %v603_v23, %v587_v19  ;;  %v609_v29 = vadd.f32 %v605_v25, %v589_v21 }
 0x1b3   : > { %610 = vst [vmem:[%s1664_s12] sm:$0xff] %v606_v26  ;;  %612 = vst [vmem:[%s1664_s12 + $0x10] sm:$0xff] %v608_v28 }
 0x1b4   : > { %611 = vst [vmem:[%s1664_s12 + $0x8] sm:$0xff] %v607_v27  ;;  %613 = vst [vmem:[%s1664_s12 + $0x18] sm:$0xff] %v609_v29 }
 0x1b5 PF: > { %s841_s10 = sshll.u32 %s1267_s28, 9  ;;  %s1864_s2 = sld [smem:[#allocation24_spill]] }
 0x1b6   : > { %s633_s7 = sshll.u32 %s1664_s12, 4  ;;  %s1727_s30 = scalar_lea.sflag [#allocation5], %s359_s17  ;;  %s1723_s7 = int_to_ptr.vmem [resolvable:$true] %s633_s7 }
 0x1b7   : > { %s1125_s16 = scalar_lea.vmem %s1723_s7, 512  ;;  %p1865_p6 = scmp.ne.s32.totalorder %s1852_s21, 0 }
 0x1b8   : > { %p1126_p3 = scmp.ne.s32.totalorder %s1723_s7, %s1125_s16  ;;  %s1291_s28 = smov [#allocation9]  }
 0x1b9   : > { %s1129_s13 = sshll.u32 %s1291_s28, 4  ;;  %s1130_s13 = int_to_ptr.vmem [resolvable:$false] %s1129_s13 }
 0x1ba   : > { %p1127_p11 = pnand %p1126_p3, %p1865_p6  ;;  %s1131_s1 = scalar_lea.vmem %s1130_s13, 1024 }
 0x1bb   : > { %s1720_s29 = scalar_lea.hbm %s1864_s2, %s841_s10  ;;  %p1132_p1 = scmp.lt.s32.totalorder %s1723_s7, %s1130_s13 }
 0x1bc   : > { %p1128_p4 = pneg %p1127_p11  ;;  %p1133_p5 = scmp.lt.s32.totalorder %s1131_s1, %s1125_s16 }
 0x1be   : > { %p1134_p0 = por %p1133_p5, %p1132_p1 }
 0x1c0   : > { %p1135_p9 = pnand %p1134_p0, %p1128_p4 }
 0x1c2   : > { %1138 = shalt.err (!%p1135_p9)
}
 0x1c3   : > { %s1139_s17 = scalar_lea.hbm %s1720_s29, 512  ;;  %s1143_s11 = scalar_lea.hbm %s1864_s2, 1024 }
 0x1c4   : > { %p1140_p10 = scmp.ne.s32.totalorder %s1720_s29, %s1139_s17  ;;  %p1144_p12 = scmp.lt.u32.totalorder %s1720_s29, %s1864_s2 }
 0x1c5   : > { %p1145_p13 = scmp.lt.u32.totalorder %s1143_s11, %s1139_s17  ;;  %p1147_p3 = scmp.lt.u32.totalorder %s1139_s17, %s1720_s29 }
 0x1c6   : > { %p1141_p8 = pnand %p1140_p10, %p1865_p6 }
 0x1c7   : > { %p1146_p7 = por %p1145_p13, %p1144_p12 }
 0x1c8   : > { %p1142_p2 = pneg %p1141_p8 }
 0x1c9   : > { %p1148_p11 = por %p1147_p3, %p1146_p7 }
 0x1cb   : > { %p1149_p4 = pnand %p1148_p11, %p1142_p2 }
 0x1cd   : > { %1152 = shalt.err (!%p1149_p4)
}
 0x1ce   : > { %s1292_s5 = smov 256   ;;  %s1293_s10 = smov 16  }
 0x1cf   : > { %896 = dma.vmem_to_hbm [thread:$0]  (%p1865_p6), %s1723_s7, 512, %s1720_s29, %s1727_s30, %s1292_s5, %s1292_s5, %s1293_s10  }
 0x1d0 PF: > { %p913_p1 = scmp.ge.s32.totalorder %s1279_s6, 2  ;;  %s648_s24 = sand.u32 1, %s1227_s18  }
 0x1d1   : > { %p1866_p5 = scmp.ne.s32.totalorder %s1853_s23, 0  ;;  %s649_s27 = scalar_lea.sflag [#allocation5], %s648_s24 }
 0x1d3   : > { %p909_p0 = pnand %p913_p1, %p1866_p5 }
 0x1d5   : > { %1222 = dma.done.wait (!%p909_p0), %s649_s27, 512  }
 0x1d6   : > { %1224 = vsyncadd (!%p909_p0), %s649_s27, 4294966784  ;;  %s24_s6 = sadd.s32 1, %s1279_s6   ;;  %s1868_s29 = sld [smem:[#allocation14_spill]] }
 0x1d7   : > { %p1756_p9 = scmp.ge.s32.totalorder %s24_s6, 10   ;;  %s1869_s23 = sld [smem:[#allocation20_spill]] }
 0x1d8   : > { %s1870_s27 = sld [smem:[#allocation16_spill]]  ;;  %s1871_s28 = sld [smem:[#allocation17_spill]] }
 0x1d9   : > { %s1872_s7 = sld [smem:[#allocation18_spill]]  ;;  %s1873_s30 = sld [smem:[#allocation19_spill]] }
 0x1da   : > { %s1874_s18 = smov %s1231_s19  ;;  %s1875_s19 = smov %s1235_s20 }
 0x1db   : > { %s1876_s20 = smov %s1563_s14  ;;  %s1877_s21 = smov %s1243_s22 }
 0x1dc   : > { %s1878_s22 = smov %s1868_s29  ;;  %s1879_s24 = smov %s1255_s25 }
 0x1dd   : > { %s1880_s25 = smov %s1259_s26  ;;  %s1881_s26 = smov %s1502_s9 }
 0x1de   :  { %23 = sbr.rel (!%p1756_p9) target bundleno = 17 (0x11), region = 123 }
 0x1df   : > { %s1882_s29 = smov %s1872_s7 }
 0x1e5   :  { %654 = vsyncpa [#allocation4], 1 }
 0x1e6   :  { %656 = vsyncpa [#allocation4 + $0x1], 1 }
 0x1e7   :  { %657 = vsyncpa [#allocation7], 1 }
 0x1e8   :  { %659 = vsyncpa [#allocation7 + $0x1], 1 }
 0x1e9   :  { %660 = vsyncpa [#allocation5], 1 }
 0x1ea   :  { %662 = vsyncpa [#allocation5 + $0x1], 1 }

</bundles_post_ra>
